<compile_context>
chip_gen: v7x
topology: tpu7x:2x2x1
jax: 0.10.0
libtpu: 0.0.40
codegen_flags: <defaults>
</compile_context>

<pallas_src>
import functools

import jax
import jax.numpy as jnp
import numpy as np
from jax import lax
from jax.experimental import pallas as pl
from jax.experimental.pallas import tpu as pltpu


def _round_up(x, m):
    return ((x + m - 1) // m) * m


# -----------------------------------------------------------------------------
# Kernels
# -----------------------------------------------------------------------------
def _supcon_mask_kernel(anchor_ref, contrast_ref, mask_ref, weight_ref, out_ref,
                        m_run, d_run, s1, s2, den, *,
                        n_total, n_pad, block_b, block_n,
                        temperature, base_temperature):
    """Streams the contrast dimension (grid axis 1) with an online softmax.

    log_prob_j = (raw_j - M) - log(D + 1e-12)  with M = row max over ALL columns and
    D = sum_j logits_mask_j * exp(raw_j - M).  The weighted positive sum is computed
    algebraically as  num = S1 - S2 * (M + log(D + 1e-12))  so no (B, N) log_prob
    tensor is ever formed.
    """
    bi = pl.program_id(0)
    ki = pl.program_id(1)
    nkk = pl.num_programs(1)

    @pl.when(ki == 0)
    def _init():
        m_run[...] = jnp.full_like(m_run, -jnp.inf)
        d_run[...] = jnp.zeros_like(d_run)
        s1[...] = jnp.zeros_like(s1)
        s2[...] = jnp.zeros_like(s2)
        den[...] = jnp.zeros_like(den)

    # Fold 1/T into the small (bb, C) operand instead of the (bb, nk) logits.
    inv_t = jnp.asarray(1.0 / temperature, dtype=anchor_ref.dtype)
    a = anchor_ref[...] * inv_t                                   # (bb, C)
    # nt-style contraction: no transpose of the contrast tile is materialized.
    raw = lax.dot_general(a, contrast_ref[...],
                          dimension_numbers=(((1,), (1,)), ((), ())),
                          preferred_element_type=jnp.float32)     # (bb, nk)

    m = mask_ref[...].astype(jnp.float32)                         # (bb, nk)
    w = weight_ref[...].astype(jnp.float32)                       # (bb, nk)

    shape = raw.shape
    row_g = bi * block_b + lax.broadcasted_iota(jnp.int32, shape, 0)
    col_g = ki * block_n + lax.broadcasted_iota(jnp.int32, shape, 1)
    not_self = row_g != col_g                                     # logits_mask chunk
    if n_pad > n_total:                                           # static (trace-time)
        col_valid = col_g < n_total
        lm = jnp.logical_and(not_self, col_valid)
        raw_for_max = jnp.where(col_valid, raw, -jnp.inf)
    else:
        lm = not_self
        raw_for_max = raw

    # Online softmax denominator. NOTE: the row max is over ALL (valid) columns,
    # including the self column, exactly as in the PyTorch reference.
    m_prev = m_run[...]
    m_new = jnp.maximum(m_prev, jnp.max(raw_for_max, axis=1, keepdims=True))
    d_run[...] = (d_run[...] * jnp.exp(m_prev - m_new) +
                  jnp.sum(jnp.where(lm, jnp.exp(raw - m_new), 0.0),
                          axis=1, keepdims=True))
    m_run[...] = m_new

    # Accumulators for the weighted positive log-prob (no full log_prob tensor).
    mm = m * not_self.astype(jnp.float32)        # mask * logits_mask (padded cols are 0)
    mw = mm * w
    s1[...] += jnp.sum(mw * raw, axis=1, keepdims=True)
    s2[...] += jnp.sum(mw, axis=1, keepdims=True)
    den[...] += jnp.sum(mm, axis=1, keepdims=True)

    @pl.when(ki == nkk - 1)
    def _finalize():
        log_z = m_run[...] + jnp.log(d_run[...] + 1e-12)
        num = s1[...] - s2[...] * log_z
        # den == 0 rows give NaN exactly like the PyTorch original.
        mean_log_prob_pos = num / den[...]
        loss_rows = -(temperature / base_temperature) * mean_log_prob_pos   # (bb, 1)
        out_ref[...] = jnp.broadcast_to(loss_rows, out_ref.shape).astype(out_ref.dtype)


def _supcon_queue_kernel(q_ref, k_ref, queue_ref, out_ref,
                         lpos, m_run, d_run, *,
                         k_total, k_pad, block_n, temperature):
    """MoCo queue branch: CE vs class 0 == logsumexp([l_pos, l_neg]) - l_pos,
    with l_neg streamed over queue chunks (grid axis 1)."""
    ki = pl.program_id(1)
    nkk = pl.num_programs(1)

    inv_t = jnp.asarray(1.0 / temperature, dtype=q_ref.dtype)
    qs = q_ref[...] * inv_t                                       # (bb, C), 1/T folded

    @pl.when(ki == 0)
    def _init():
        lp = jnp.sum(qs.astype(jnp.float32) * k_ref[...].astype(jnp.float32),
                     axis=1, keepdims=True)                       # (bb, 1) = (q.k)/T
        lpos[...] = lp
        m_run[...] = lp                                           # running max seeded with l_pos
        d_run[...] = jnp.ones_like(lp)                            # exp(l_pos - l_pos) = 1

    neg = lax.dot_general(qs, queue_ref[...],
                          dimension_numbers=(((1,), (1,)), ((), ())),
                          preferred_element_type=jnp.float32)     # (bb, nk)
    if k_pad > k_total:                                           # static (trace-time)
        col_g = ki * block_n + lax.broadcasted_iota(jnp.int32, neg.shape, 1)
        neg = jnp.where(col_g < k_total, neg, -jnp.inf)

    m_prev = m_run[...]
    m_new = jnp.maximum(m_prev, jnp.max(neg, axis=1, keepdims=True))
    d_run[...] = (d_run[...] * jnp.exp(m_prev - m_new) +
                  jnp.sum(jnp.exp(neg - m_new), axis=1, keepdims=True))
    m_run[...] = m_new

    @pl.when(ki == nkk - 1)
    def _finalize():
        lse = m_run[...] + jnp.log(d_run[...])
        loss_rows = lse - lpos[...]                               # (bb, 1)
        out_ref[...] = jnp.broadcast_to(loss_rows, out_ref.shape).astype(out_ref.dtype)


# -----------------------------------------------------------------------------
# Wrapper
# -----------------------------------------------------------------------------
def supcon_loss(features, mask=None, weight=None, batch_size=-1,
                temperature=0.07, base_temperature=0.07,
                block_b=128, block_n=512):
    """Forward pass of SupConLoss. `features` is (N, C); mask/weight are (B, N)."""
    N, C = features.shape
    B = int(batch_size)

    bb_req = max(8, _round_up(block_b, 8))
    nk_req = max(128, _round_up(block_n, 128))

    if mask is not None:
        if weight is None:
            weight = jnp.ones_like(mask, dtype=jnp.float32)

        bb = min(bb_req, _round_up(B, 8))
        b_pad = _round_up(B, bb)
        nk = min(nk_req, _round_up(N, 128))
        n_pad = _round_up(N, nk)

        anchor = jnp.pad(features[:B], ((0, b_pad - B), (0, 0)))
        contrast = jnp.pad(features, ((0, n_pad - N), (0, 0)))
        mask_p = jnp.pad(mask.astype(jnp.float32), ((0, b_pad - B), (0, n_pad - N)))
        weight_p = jnp.pad(weight.astype(jnp.float32), ((0, b_pad - B), (0, n_pad - N)))

        kernel = functools.partial(
            _supcon_mask_kernel,
            n_total=N, n_pad=n_pad, block_b=bb, block_n=nk,
            temperature=float(temperature), base_temperature=float(base_temperature))

        out = pl.pallas_call(
            kernel,
            grid=(b_pad // bb, n_pad // nk),
            in_specs=[
                pl.BlockSpec((bb, C), lambda bi, ki: (bi, 0)),   # anchor (resident per bi)
                pl.BlockSpec((nk, C), lambda bi, ki: (ki, 0)),   # contrast chunk (streamed)
                pl.BlockSpec((bb, nk), lambda bi, ki: (bi, ki)),  # mask chunk
                pl.BlockSpec((bb, nk), lambda bi, ki: (bi, ki)),  # weight chunk
            ],
            out_specs=pl.BlockSpec((bb, 128), lambda bi, ki: (bi, 0)),
            out_shape=jax.ShapeDtypeStruct((b_pad, 128), jnp.float32),
            scratch_shapes=[pltpu.VMEM((bb, 1), jnp.float32) for _ in range(5)],
            compiler_params=pltpu.CompilerParams(
                dimension_semantics=("parallel", "arbitrary"),
                vmem_limit_bytes=32 * 1024 * 1024),
        )(anchor, contrast, mask_p, weight_p)

        return jnp.sum(out[:B, 0]) / B

    else:
        K = N - 2 * B
        bb = min(bb_req, _round_up(B, 8))
        b_pad = _round_up(B, bb)
        nk = min(nk_req, _round_up(K, 128))
        k_pad = _round_up(K, nk)

        q = jnp.pad(features[:B], ((0, b_pad - B), (0, 0)))
        k_feat = jnp.pad(features[B:2 * B], ((0, b_pad - B), (0, 0)))
        queue = jnp.pad(features[2 * B:], ((0, k_pad - K), (0, 0)))

        kernel = functools.partial(
            _supcon_queue_kernel,
            k_total=K, k_pad=k_pad, block_n=nk, temperature=float(temperature))

        out = pl.pallas_call(
            kernel,
            grid=(b_pad // bb, k_pad // nk),
            in_specs=[
                pl.BlockSpec((bb, C), lambda bi, ki: (bi, 0)),   # q (resident per bi)
                pl.BlockSpec((bb, C), lambda bi, ki: (bi, 0)),   # k (resident per bi)
                pl.BlockSpec((nk, C), lambda bi, ki: (ki, 0)),   # queue chunk (streamed)
            ],
            out_specs=pl.BlockSpec((bb, 128), lambda bi, ki: (bi, 0)),
            out_shape=jax.ShapeDtypeStruct((b_pad, 128), jnp.float32),
            scratch_shapes=[pltpu.VMEM((bb, 1), jnp.float32) for _ in range(3)],
            compiler_params=pltpu.CompilerParams(
                dimension_semantics=("parallel", "arbitrary"),
                vmem_limit_bytes=32 * 1024 * 1024),
        )(q, k_feat, queue)

        return jnp.sum(out[:B, 0]) / B


# -----------------------------------------------------------------------------
# Pure-JAX references (mirror of the PyTorch forward) for verification
# -----------------------------------------------------------------------------
def _ref_mask_branch(features, mask, weight, batch_size, T, base_T):
    f = features.astype(jnp.float32)
    B = batch_size
    N = f.shape[0]
    logits = (f[:B] @ f.T) / T
    logits = logits - jnp.max(logits, axis=1, keepdims=True)
    logits_mask = jnp.ones((B, N), jnp.float32).at[jnp.arange(B), jnp.arange(B)].set(0.0)
    m = mask.astype(jnp.float32) * logits_mask
    exp_logits = jnp.exp(logits) * logits_mask
    log_prob = logits - jnp.log(exp_logits.sum(1, keepdims=True) + 1e-12)
    mean_log_prob_pos = (m * weight * log_prob).sum(1) / m.sum(1)
    return jnp.mean(-(T / base_T) * mean_log_prob_pos)


def _ref_queue_branch(features, batch_size, T):
    f = features.astype(jnp.float32)
    B = batch_size
    q, k, queue = f[:B], f[B:2 * B], f[2 * B:]
    l_pos = jnp.sum(q * k, axis=1, keepdims=True)
    l_neg = q @ queue.T
    logits = jnp.concatenate([l_pos, l_neg], axis=1) / T
    lse = jax.nn.logsumexp(logits, axis=1)
    return jnp.mean(lse - logits[:, 0])


# -----------------------------------------------------------------------------
if __name__ == "__main__":
    key = jax.random.PRNGKey(0)
    kf, kw, kq = jax.random.split(key, 3)

    TEMP = 0.07            # args.moco_t
    C = 64                 # feature dim

    # ---- branch 1: supervised-mask branch (multi-chunk streaming + padding) --
    N1, B1 = 300, 24       # N_pad=384 -> 3 contrast chunks of 128; 3 anchor blocks of 8
    feats1 = jax.random.normal(kf, (N1, C), dtype=jnp.float32)
    feats1 = feats1 / jnp.linalg.norm(feats1, axis=1, keepdims=True)
    labels = jnp.arange(N1) % 5
    mask = (labels[:B1, None] == labels[None, :]).astype(jnp.float32)       # (24, 300)
    weight = jax.random.uniform(kw, (B1, N1), dtype=jnp.float32)            # (24, 300)

    loss_mask = supcon_loss(feats1, mask=mask, weight=weight, batch_size=B1,
                            temperature=TEMP, base_temperature=TEMP,
                            block_b=8, block_n=128)
    loss_mask = jax.block_until_ready(loss_mask)
    ref_mask = _ref_mask_branch(feats1, mask, weight, B1, TEMP, TEMP)
    np.testing.assert_allclose(np.asarray(loss_mask), np.asarray(ref_mask),
                               rtol=1e-4, atol=1e-4)

    # ---- branch 2: MoCo queue branch (mask is None) --------------------------
    B2, K2 = 16, 200
    N2 = 2 * B2 + K2       # 232 total rows; K_pad=256 -> 2 streamed queue chunks
    feats2 = jax.random.normal(kq, (N2, C), dtype=jnp.float32)
    feats2 = feats2 / jnp.linalg.norm(feats2, axis=1, keepdims=True)

    loss_queue = supcon_loss(feats2, mask=None, weight=None, batch_size=B2,
                             temperature=TEMP, base_temperature=TEMP,
                             block_b=8, block_n=128)
    loss_queue = jax.block_until_ready(loss_queue)
    ref_queue = _ref_queue_branch(feats2, B2, TEMP)
    np.testing.assert_allclose(np.asarray(loss_queue), np.asarray(ref_queue),
                               rtol=1e-4, atol=1e-4)

    print("KERNEL_OK")
</pallas_src>

<mosaic_0001>
module attributes {stable_mosaic.version = 11 : i64} {
  func.func @_supcon_mask_kernel(%arg0: i32, %arg1: i32, %arg2: memref<8x64xf32, #tpu.memory_space<vmem>>, %arg3: memref<128x64xf32, #tpu.memory_space<vmem>>, %arg4: memref<8x128xf32, #tpu.memory_space<vmem>>, %arg5: memref<8x128xf32, #tpu.memory_space<vmem>>, %arg6: memref<8x128xf32, #tpu.memory_space<vmem>>, %arg7: memref<8x1xf32, #tpu.memory_space<vmem>>, %arg8: memref<8x1xf32, #tpu.memory_space<vmem>>, %arg9: memref<8x1xf32, #tpu.memory_space<vmem>>, %arg10: memref<8x1xf32, #tpu.memory_space<vmem>>, %arg11: memref<8x1xf32, #tpu.memory_space<vmem>>) attributes {dimension_semantics = [#tpu.dimension_semantics<parallel>, #tpu.dimension_semantics<arbitrary>], iteration_bounds = array<i64: 3, 3>, scalar_prefetch = 0 : i64, scratch_operands = 5 : i64, tpu.core_type = #tpu.core_type<tc>, window_params = [{transform_indices = @transform_0, window_bounds = array<i64: 8, 64>}, {transform_indices = @transform_1, window_bounds = array<i64: 128, 64>}, {transform_indices = @transform_2, window_bounds = array<i64: 8, 128>}, {transform_indices = @transform_3, window_bounds = array<i64: 8, 128>}, {transform_indices = @transform_4, window_bounds = array<i64: 8, 128>}]} {
    %c0_i32 = arith.constant 0 : i32
    %0 = arith.cmpi eq, %arg1, %c0_i32 : i32
    %1 = arith.extui %0 : i1 to i32
    %c0_i32_0 = arith.constant 0 : i32
    %2 = arith.cmpi ne, %1, %c0_i32_0 : i32
    scf.if %2 {
      %cst_37 = arith.constant 0xFF800000 : f32
      %65 = vector.broadcast %cst_37 : f32 to vector<8x1xf32>
      %c0_38 = arith.constant 0 : index
      %c0_39 = arith.constant 0 : index
      %66 = vector.load %arg7[%c0_38, %c0_39] : memref<8x1xf32, #tpu.memory_space<vmem>>, vector<8x1xf32>
      tpu.vector_store %arg7[%c0_38, %c0_39], %65 {strides = array<i32>} : memref<8x1xf32, #tpu.memory_space<vmem>>, vector<8x1xf32>,
      %cst_40 = arith.constant 0.000000e+00 : f32
      %67 = vector.broadcast %cst_40 : f32 to vector<8x1xf32>
      %c0_41 = arith.constant 0 : index
      %c0_42 = arith.constant 0 : index
      %68 = vector.load %arg8[%c0_41, %c0_42] : memref<8x1xf32, #tpu.memory_space<vmem>>, vector<8x1xf32>
      tpu.vector_store %arg8[%c0_41, %c0_42], %67 {strides = array<i32>} : memref<8x1xf32, #tpu.memory_space<vmem>>, vector<8x1xf32>,
      %cst_43 = arith.constant 0.000000e+00 : f32
      %69 = vector.broadcast %cst_43 : f32 to vector<8x1xf32>
      %c0_44 = arith.constant 0 : index
      %c0_45 = arith.constant 0 : index
      %70 = vector.load %arg9[%c0_44, %c0_45] : memref<8x1xf32, #tpu.memory_space<vmem>>, vector<8x1xf32>
      tpu.vector_store %arg9[%c0_44, %c0_45], %69 {strides = array<i32>} : memref<8x1xf32, #tpu.memory_space<vmem>>, vector<8x1xf32>,
      %cst_46 = arith.constant 0.000000e+00 : f32
      %71 = vector.broadcast %cst_46 : f32 to vector<8x1xf32>
      %c0_47 = arith.constant 0 : index
      %c0_48 = arith.constant 0 : index
      %72 = vector.load %arg10[%c0_47, %c0_48] : memref<8x1xf32, #tpu.memory_space<vmem>>, vector<8x1xf32>
      tpu.vector_store %arg10[%c0_47, %c0_48], %71 {strides = array<i32>} : memref<8x1xf32, #tpu.memory_space<vmem>>, vector<8x1xf32>,
      %cst_49 = arith.constant 0.000000e+00 : f32
      %73 = vector.broadcast %cst_49 : f32 to vector<8x1xf32>
      %c0_50 = arith.constant 0 : index
      %c0_51 = arith.constant 0 : index
      %74 = vector.load %arg11[%c0_50, %c0_51] : memref<8x1xf32, #tpu.memory_space<vmem>>, vector<8x1xf32>
      tpu.vector_store %arg11[%c0_50, %c0_51], %73 {strides = array<i32>} : memref<8x1xf32, #tpu.memory_space<vmem>>, vector<8x1xf32>,
    } else {
    }
    %c0 = arith.constant 0 : index
    %c0_1 = arith.constant 0 : index
    %3 = vector.load %arg2[%c0, %c0_1] : memref<8x64xf32, #tpu.memory_space<vmem>>, vector<8x64xf32>
    %cst = arith.constant 14.2857141 : f32
    %4 = vector.broadcast %cst : f32 to vector<8x64xf32>
    %5 = arith.mulf %3, %4 : vector<8x64xf32>
    %c0_2 = arith.constant 0 : index
    %c0_3 = arith.constant 0 : index
    %6 = vector.load %arg3[%c0_2, %c0_3] : memref<128x64xf32, #tpu.memory_space<vmem>>, vector<128x64xf32>
    %cst_4 = arith.constant dense<0.000000e+00> : vector<8x128xf32>
    %7 = tpu.matmul %5, %6, %cst_4 {dimension_numbers = #tpu.dot_dimension_numbers<[1], [1], [0], [0], [0, 0, 1, 0], [], []>} : vector<8x64xf32>, vector<128x64xf32>, vector<8x128xf32> -> vector<8x128xf32>
    %c0_5 = arith.constant 0 : index
    %c0_6 = arith.constant 0 : index
    %8 = vector.load %arg4[%c0_5, %c0_6] : memref<8x128xf32, #tpu.memory_space<vmem>>, vector<8x128xf32>
    %c0_7 = arith.constant 0 : index
    %c0_8 = arith.constant 0 : index
    %9 = vector.load %arg5[%c0_7, %c0_8] : memref<8x128xf32, #tpu.memory_space<vmem>>, vector<8x128xf32>
    %c8_i32 = arith.constant 8 : i32
    %10 = arith.muli %arg0, %c8_i32 : i32
    %11 = tpu.iota {dimensions = array<i32: 0>} : vector<8x128xi32>
    %12 = vector.broadcast %10 : i32 to vector<8x128xi32>
    %13 = arith.addi %12, %11 : vector<8x128xi32>
    %c128_i32 = arith.constant 128 : i32
    %14 = arith.muli %arg1, %c128_i32 : i32
    %15 = tpu.iota {dimensions = array<i32: 1>} : vector<8x128xi32>
    %16 = vector.broadcast %14 : i32 to vector<8x128xi32>
    %17 = arith.addi %16, %15 : vector<8x128xi32>
    %18 = arith.cmpi ne, %13, %17 : vector<8x128xi32>
    %c300_i32 = arith.constant 300 : i32
    %19 = vector.broadcast %c300_i32 : i32 to vector<8x128xi32>
    %20 = arith.cmpi slt, %17, %19 : vector<8x128xi32>
    %21 = arith.andi %18, %20 : vector<8x128xi1>
    %cst_9 = arith.constant 0xFF800000 : f32
    %22 = vector.broadcast %cst_9 : f32 to vector<8x128xf32>
    %23 = arith.select %20, %7, %22 : vector<8x128xi1>, vector<8x128xf32>
    %c0_10 = arith.constant 0 : index
    %c0_11 = arith.constant 0 : index
    %24 = vector.load %arg7[%c0_10, %c0_11] : memref<8x1xf32, #tpu.memory_space<vmem>>, vector<8x1xf32>
    %cst_12 = arith.constant dense<0xFF800000> : vector<8xf32>
    %25 = vector.multi_reduction <maximumf>, %23, %cst_12 [1] : vector<8x128xf32> to vector<8xf32>
    %26 = vector.shape_cast %25 : vector<8xf32> to vector<8x1xf32>
    %27 = arith.maximumf %24, %26 : vector<8x1xf32>
    %c0_13 = arith.constant 0 : index
    %c0_14 = arith.constant 0 : index
    %28 = vector.load %arg8[%c0_13, %c0_14] : memref<8x1xf32, #tpu.memory_space<vmem>>, vector<8x1xf32>
    %29 = arith.subf %24, %27 : vector<8x1xf32>
    %30 = math.exp %29 : vector<8x1xf32>
    %31 = arith.mulf %28, %30 : vector<8x1xf32>
    %32 = vector.broadcast %27 : vector<8x1xf32> to vector<8x128xf32>
    %33 = arith.subf %7, %32 : vector<8x128xf32>
    %34 = math.exp %33 : vector<8x128xf32>
    %cst_15 = arith.constant 0.000000e+00 : f32
    %35 = vector.broadcast %cst_15 : f32 to vector<8x128xf32>
    %36 = arith.select %21, %34, %35 : vector<8x128xi1>, vector<8x128xf32>
    %cst_16 = arith.constant dense<0.000000e+00> : vector<8xf32>
    %37 = vector.multi_reduction <add>, %36, %cst_16 [1] : vector<8x128xf32> to vector<8xf32>
    %38 = vector.shape_cast %37 : vector<8xf32> to vector<8x1xf32>
    %39 = arith.addf %31, %38 : vector<8x1xf32>
    %c0_17 = arith.constant 0 : index
    %c0_18 = arith.constant 0 : index
    %40 = vector.load %arg8[%c0_17, %c0_18] : memref<8x1xf32, #tpu.memory_space<vmem>>, vector<8x1xf32>
    tpu.vector_store %arg8[%c0_17, %c0_18], %39 {strides = array<i32>} : memref<8x1xf32, #tpu.memory_space<vmem>>, vector<8x1xf32>,
    %c0_19 = arith.constant 0 : index
    %c0_20 = arith.constant 0 : index
    %41 = vector.load %arg7[%c0_19, %c0_20] : memref<8x1xf32, #tpu.memory_space<vmem>>, vector<8x1xf32>
    tpu.vector_store %arg7[%c0_19, %c0_20], %27 {strides = array<i32>} : memref<8x1xf32, #tpu.memory_space<vmem>>, vector<8x1xf32>,
    %42 = arith.extui %18 : vector<8x128xi1> to vector<8x128xi32>
    %43 = arith.sitofp %42 : vector<8x128xi32> to vector<8x128xf32>
    %44 = arith.mulf %8, %43 : vector<8x128xf32>
    %45 = arith.mulf %44, %9 : vector<8x128xf32>
    %c0_21 = arith.constant 0 : index
    %c0_22 = arith.constant 0 : index
    %46 = vector.load %arg9[%c0_21, %c0_22] : memref<8x1xf32, #tpu.memory_space<vmem>>, vector<8x1xf32>
    %47 = arith.mulf %45, %7 : vector<8x128xf32>
    %cst_23 = arith.constant dense<0.000000e+00> : vector<8xf32>
    %48 = vector.multi_reduction <add>, %47, %cst_23 [1] : vector<8x128xf32> to vector<8xf32>
    %49 = vector.shape_cast %48 : vector<8xf32> to vector<8x1xf32>
    %50 = arith.addf %46, %49 : vector<8x1xf32>
    %c0_24 = arith.constant 0 : index
    %c0_25 = arith.constant 0 : index
    %51 = vector.load %arg9[%c0_24, %c0_25] : memref<8x1xf32, #tpu.memory_space<vmem>>, vector<8x1xf32>
    tpu.vector_store %arg9[%c0_24, %c0_25], %50 {strides = array<i32>} : memref<8x1xf32, #tpu.memory_space<vmem>>, vector<8x1xf32>,
    %c0_26 = arith.constant 0 : index
    %c0_27 = arith.constant 0 : index
    %52 = vector.load %arg10[%c0_26, %c0_27] : memref<8x1xf32, #tpu.memory_space<vmem>>, vector<8x1xf32>
    %cst_28 = arith.constant dense<0.000000e+00> : vector<8xf32>
    %53 = vector.multi_reduction <add>, %45, %cst_28 [1] : vector<8x128xf32> to vector<8xf32>
    %54 = vector.shape_cast %53 : vector<8xf32> to vector<8x1xf32>
    %55 = arith.addf %52, %54 : vector<8x1xf32>
    %c0_29 = arith.constant 0 : index
    %c0_30 = arith.constant 0 : index
    %56 = vector.load %arg10[%c0_29, %c0_30] : memref<8x1xf32, #tpu.memory_space<vmem>>, vector<8x1xf32>
    tpu.vector_store %arg10[%c0_29, %c0_30], %55 {strides = array<i32>} : memref<8x1xf32, #tpu.memory_space<vmem>>, vector<8x1xf32>,
    %c0_31 = arith.constant 0 : index
    %c0_32 = arith.constant 0 : index
    %57 = vector.load %arg11[%c0_31, %c0_32] : memref<8x1xf32, #tpu.memory_space<vmem>>, vector<8x1xf32>
    %cst_33 = arith.constant dense<0.000000e+00> : vector<8xf32>
    %58 = vector.multi_reduction <add>, %44, %cst_33 [1] : vector<8x128xf32> to vector<8xf32>
    %59 = vector.shape_cast %58 : vector<8xf32> to vector<8x1xf32>
    %60 = arith.addf %57, %59 : vector<8x1xf32>
    %c0_34 = arith.constant 0 : index
    %c0_35 = arith.constant 0 : index
    %61 = vector.load %arg11[%c0_34, %c0_35] : memref<8x1xf32, #tpu.memory_space<vmem>>, vector<8x1xf32>
    tpu.vector_store %arg11[%c0_34, %c0_35], %60 {strides = array<i32>} : memref<8x1xf32, #tpu.memory_space<vmem>>, vector<8x1xf32>,
    %c2_i32 = arith.constant 2 : i32
    %62 = arith.cmpi eq, %arg1, %c2_i32 : i32
    %63 = arith.extui %62 : i1 to i32
    %c0_i32_36 = arith.constant 0 : i32
    %64 = arith.cmpi ne, %63, %c0_i32_36 : i32
    scf.if %64 {
      %c0_37 = arith.constant 0 : index
      %c0_38 = arith.constant 0 : index
      %65 = vector.load %arg7[%c0_37, %c0_38] : memref<8x1xf32, #tpu.memory_space<vmem>>, vector<8x1xf32>
      %c0_39 = arith.constant 0 : index
      %c0_40 = arith.constant 0 : index
      %66 = vector.load %arg8[%c0_39, %c0_40] : memref<8x1xf32, #tpu.memory_space<vmem>>, vector<8x1xf32>
      %cst_41 = arith.constant 9.99999996E-13 : f32
      %67 = vector.broadcast %cst_41 : f32 to vector<8x1xf32>
      %68 = arith.addf %66, %67 : vector<8x1xf32>
      %69 = math.log %68 : vector<8x1xf32>
      %70 = arith.addf %65, %69 : vector<8x1xf32>
      %c0_42 = arith.constant 0 : index
      %c0_43 = arith.constant 0 : index
      %71 = vector.load %arg9[%c0_42, %c0_43] : memref<8x1xf32, #tpu.memory_space<vmem>>, vector<8x1xf32>
      %c0_44 = arith.constant 0 : index
      %c0_45 = arith.constant 0 : index
      %72 = vector.load %arg10[%c0_44, %c0_45] : memref<8x1xf32, #tpu.memory_space<vmem>>, vector<8x1xf32>
      %73 = arith.mulf %72, %70 : vector<8x1xf32>
      %74 = arith.subf %71, %73 : vector<8x1xf32>
      %c0_46 = arith.constant 0 : index
      %c0_47 = arith.constant 0 : index
      %75 = vector.load %arg11[%c0_46, %c0_47] : memref<8x1xf32, #tpu.memory_space<vmem>>, vector<8x1xf32>
      %76 = arith.divf %74, %75 : vector<8x1xf32>
      %cst_48 = arith.constant -1.000000e+00 : f32
      %77 = vector.broadcast %cst_48 : f32 to vector<8x1xf32>
      %78 = arith.mulf %77, %76 : vector<8x1xf32>
      %79 = vector.shape_cast %78 : vector<8x1xf32> to vector<8x1xf32>
      %80 = vector.broadcast %79 : vector<8x1xf32> to vector<8x128xf32>
      %c0_49 = arith.constant 0 : index
      %c0_50 = arith.constant 0 : index
      %81 = vector.load %arg6[%c0_49, %c0_50] : memref<8x128xf32, #tpu.memory_space<vmem>>, vector<8x128xf32>
      tpu.vector_store %arg6[%c0_49, %c0_50], %80 {strides = array<i32>} : memref<8x128xf32, #tpu.memory_space<vmem>>, vector<8x128xf32>,
    } else {
    }
    return
  }
  func.func @transform_0(%arg0: i32, %arg1: i32) -> (i32, i32) {
    %c0_i32 = arith.constant 0 : i32
    %c0_i32_0 = arith.constant 0 : i32
    return %arg0, %c0_i32 : i32, i32
  }
  func.func @transform_1(%arg0: i32, %arg1: i32) -> (i32, i32) {
    %c0_i32 = arith.constant 0 : i32
    %c0_i32_0 = arith.constant 0 : i32
    return %arg1, %c0_i32 : i32, i32
  }
  func.func @transform_2(%arg0: i32, %arg1: i32) -> (i32, i32) {
    %c0_i32 = arith.constant 0 : i32
    return %arg0, %arg1 : i32, i32
  }
  func.func @transform_3(%arg0: i32, %arg1: i32) -> (i32, i32) {
    %c0_i32 = arith.constant 0 : i32
    return %arg0, %arg1 : i32, i32
  }
  func.func @transform_4(%arg0: i32, %arg1: i32) -> (i32, i32) {
    %c0_i32 = arith.constant 0 : i32
    %c0_i32_0 = arith.constant 0 : i32
    return %arg0, %c0_i32 : i32, i32
  }
}

</mosaic_0001>

<bundles_post_ra>
// kernel: tpu_custom_call.1
= control target key start
LH: loop header
LB: loop body
LE: loop exit
PB: predicated region body
PF: predicated region fallthrough
CT: control target
= control target key end

     0   :  { %9 = vsyncpa [#allocation8], 0  ;;  %s1206_s0 = inlined_call_operand.vmem [shape: f32[24,64], index: 0, kind: input, shape index: {}]   ;;  %s1207_s1 = inlined_call_operand.vmem [shape: f32[384,64], index: 1, kind: input, shape index: {}]   ;;  %s1208_s2 = inlined_call_operand.vmem [shape: f32[24,384], index: 2, kind: input, shape index: {}]   ;;  %s1209_s3 = inlined_call_operand.vmem [shape: f32[24,384], index: 3, kind: input, shape index: {}]   ;;  %s1210_s4 = inlined_call_operand.hbm [shape: f32[24,128], index: 4, kind: output, shape index: {}]  }
   0x1   :  { %11 = vsyncpa [#allocation8 + $0x1], 0  ;;  %s994_s15 = smov 0   ;;  %s996_s16 = smov 0  }
   0x2   :  { %s998_s17 = smov 0   ;;  %s1000_s18 = smov 0  }
   0x3   :  { %s1002_s19 = smov 0   ;;  %s1004_s20 = smov 0  }
   0x4   :  { %s1006_s21 = smov 0   ;;  %s1008_s22 = smov 0  }
   0x5 LB: > { %1217 = sst [smem:[#allocation10_spill]] %s939_s17  ;;  %s655_s23 = sadd.s32 4294967295, %s959_s22   ;;  %s959_s22 = sphi %s1008_s22, %s17_s22   ;;  %s955_s21 = sphi %s1006_s21, %s1235_s21   ;;  %s951_s20 = sphi %s1004_s20, %s1239_s20   ;;  %s947_s19 = sphi %s1002_s19, %s1233_s19   ;;  %s943_s18 = sphi %s1000_s18, %s1232_s18   ;;  %s939_s17 = sphi %s998_s17, %s1238_s17   ;;  %s935_s16 = sphi %s996_s16, %s1237_s16   ;;  %s931_s15 = sphi %s994_s15, %s1236_s15  }
   0x6   : > { %1218 = sst [smem:[#allocation11_spill]] %s951_s20  ;;  %s656_s24 = sadd.s32 4294967294, %s959_s22  }
   0x7   : > { %1219 = sst [smem:[#allocation12_spill]] %s955_s21  ;;  %s26_s25 = sadd.s32 1, %s951_s20 }
   0x8   : > { %p27_p0 = scmp.ge.s32.totalorder %s26_s25, 3  ;;  %s29_s26 = sadd.s32 1, %s955_s21 }
   0x9   : > { %p154_p1 = scmp.ne.s32.totalorder %s939_s17, %s935_s16  ;;  %p155_p2 = scmp.eq.s32.totalorder %s655_s23, 8 }
   0xa   : > { %s1241_s25 = smov (%p27_p0, %s26_s25), 0  ;;  %s1243_s26 = smov (!%p27_p0, %s29_s26), %s955_s21 }
   0xb   : > { %1220 = sst [smem:[#allocation13_spill]] %s1241_s25  ;;  %p1043_p3 = por %p155_p2, %p154_p1 }
   0xc   : > { %p160_p4 = scmp.ne.s32.totalorder %s935_s16, %s931_s15  ;;  %p31_p5 = scmp.ge.s32.totalorder %s1243_s26, 3 }
   0xd   : > { %p161_p6 = scmp.eq.s32.totalorder %s656_s24, 8  ;;  %p659_p7 = scmp.ge.s32.totalorder %s959_s22, 1 }
   0xe   : > { %p217_p8 = scmp.lt.s32.totalorder %s959_s22, 10  ;;  %s1245_s26 = smov (%p31_p5, %s1243_s26), 0 }
   0xf   : > { %1222 = sst [smem:[#allocation14_spill]] %s1245_s26  ;;  %p1053_p9 = por %p161_p6, %p160_p4 }
  0x10   : > { %p218_p10 = pnand %p659_p7, %p217_p8  ;;  %s141_s29 = ssub.s32 %s955_s21, %s1245_s26 }
  0x11   : > { %s1223_s28 = scalar_select %p1053_p9, 1, 0 }
  0x12   : > { %s144_s30 = sadd.s32 1, %s939_s17  ;;  %p142_p11 = scmp.eq.s32.totalorder %s141_s29, 0 }
  0x13   : > { %1224 = sst [smem:[#allocation15_spill]] %s1223_s28  ;;  %221 = sbr.rel (%p218_p10) target bundleno = 937 (0x3a9), region = 36 }
  0x14   : > { %s1061_s5 = scalar_select %p142_p11, %s939_s17, %s144_s30  }
  0x15   : > { %s1211_s6 = sand.u32 (!%p218_p10), 1, %s935_s16   ;;  %p263_p12 = scmp.lt.s32.totalorder (!%p218_p10), %s947_s19, 2 }
  0x16   : > { %1225 = sst [smem:[#allocation16_spill]] %s1061_s5  ;;  %s1067_s7 = sshll.u32 (!%p218_p10), %s1211_s6, 3 }
  0x17   : > { %s662_s8 = sshll.u32 (!%p218_p10), %s943_s18, 4  ;;  %p275_p0 = scmp.lt.s32.totalorder (!%p218_p10), %s943_s18, 2 }
  0x18   : > { %p268_p13 = scmp.lt.s32.totalorder (!%p218_p10), %s662_s8, 47  ;;  %p666_p1 = scmp.ne.s32.totalorder (!%p218_p10), %s943_s18, 0 }
  0x1a   : > { %s264_s9 = scalar_select %p263_p12, %s947_s19, 2 }
  0x1b   : > { %s1247_s8 = smov (!%p268_p13, %s662_s8), 47  ;;  %vm293_vm0 = vcmask (!%p666_p1), 7168   ;;  %v961_v0 = vmov (!%p666_p1), -inf   ;;  %v962_v1 = vmov (!%p666_p1), 0.0  }
  0x1c   : > { %s661_s10 = sshll.u32 %s264_s9, 3  ;;  %s663_s14 = sshll.u32 %s1247_s8, 3  ;;  %294 = vst.msk [vmem:[#allocation2] sm:$0xff] (!%p666_p1), %vm293_vm0, %v961_v0  ;;  %295 = vst.msk [vmem:[#allocation3] sm:$0xff] (!%p666_p1), %vm293_vm0, %v962_v1 }
  0x1d   : > { %s1075_s13 = scalar_lea.vmem %s1206_s0, %s661_s10  ;;  %s1080_s29 = scalar_lea.vmem %s1207_s1, %s663_s14  ;;  %296 = vst.msk [vmem:[#allocation4] sm:$0xff] (!%p666_p1), %vm293_vm0, %v962_v1  ;;  %297 = vst.msk [vmem:[#allocation5] sm:$0xff] (!%p666_p1), %vm293_vm0, %v962_v1 }
  0x1e   : > { %s776_s30 = smul.u32 3, %s264_s9  ;;  %s262_s8 = scalar_lea.vmem [#allocation7], %s1067_s7  ;;  %298 = vst.msk [vmem:[#allocation6] sm:$0xff] (!%p666_p1), %vm293_vm0, %v962_v1 }
  0x1f   : > { %s276_s6 = scalar_select %p275_p0, %s943_s18, 2 }
  0x20   : > { %292 = sbr.rel (%p666_p1) target bundleno = 39 (0x27), region = 40 }
  0x21   : > { %s278_s26 = sadd.s32 %s776_s30, %s276_s6 }
  0x22   : > { %s664_s25 = sshll.u32 %s278_s26, 3 }
  0x23   : > { %s1086_s5 = scalar_lea.vmem %s1208_s2, %s664_s25  ;;  %s1091_s10 = scalar_lea.vmem %s1209_s3, %s664_s25 }
  0x27 PF: > { %v301_v2 = vld [vmem:[%s1080_s29] sm:$0xff]  ;;  %v302_v3 = vld [vmem:[%s1080_s29 + $0x8] sm:$0xff]  ;;  %vm317_vm1 = vcmask 523264   ;;  %v963_v4 = vmov 0.0|0.0   ;;  %vm964_vm3 = vmmov 0   ;;  %v965_v7 = vmov 0.0  }
  0x28   : > { %744 = vmatprep.subr.bf16.mxu0 %v963_v4  ;;  %v745_v5 = vpack.c.bf16 %v302_v3, %v301_v2  ;;  %vm1099_vm2 = vmpackc.low %vm317_vm1, %vm317_vm1  ;;  %741 = vmatprep.mubr.msk.f32.mxu0 %vm964_vm3, %v965_v7  ;;  %v303_v8 = vld [vmem:[%s1080_s29 + $0x10] sm:$0xff]  ;;  %v304_v9 = vld [vmem:[%s1080_s29 + $0x18] sm:$0xff]  ;;  %v442_v31 = vlaneseq  ;;  %s684_s17 = sshll.u32 %s947_s19, 3  ;;  %s685_s20 = sshll.u32 %s943_s18, 7  ;;  %v966_v47 = vmov 0   ;;  %vm476_vm6 = vcmask 7168  }
  0x29   : > { %v749_v10 = vpack.c.bf16 %v304_v9, %v303_v8  ;;  %v305_v11 = vld [vmem:[%s1080_s29 + $0x20] sm:$0xff]  ;;  %v306_v12 = vld [vmem:[%s1080_s29 + $0x28] sm:$0xff]  ;;  %v307_v14 = vld [vmem:[%s1080_s29 + $0x30] sm:$0xff]  ;;  %v444_v34 = vstv %s684_s17  ;;  %855 = vset.pattern.permute.xlu0 %v966_v47  ;;  %p687_p2 = scmp.ne.s32.totalorder %s943_s18, 2 }
  0x2a   : > { %747 = vmatpush3.bf16.xpose.msk.msra.mxu0 %vm1099_vm2, %v745_v5  ;;  %v753_v13 = vpack.c.bf16 %v306_v12, %v305_v11  ;;  %v308_v15 = vld [vmem:[%s1080_s29 + $0x38] sm:$0xff]  ;;  %v309_v17 = vld [vmem:[%s1080_s29 + $0x40] sm:$0xff]  ;;  %v310_v18 = vld [vmem:[%s1080_s29 + $0x48] sm:$0xff]  ;;  %v443_v32 = vshrl.u32 %v442_v31, 7  ;;  %v448_v33 = vand.u32 127, %v442_v31  ;;  %v449_v35 = vstv %s685_s20 }
  0x2b   : > { %748 = vmatprep.subr.bf16.mxu0 %v963_v4  ;;  %v757_v16 = vpack.c.bf16 %v308_v15, %v307_v14  ;;  %v761_v19 = vpack.c.bf16 %v310_v18, %v309_v17  ;;  %v311_v20 = vld [vmem:[%s1080_s29 + $0x50] sm:$0xff]  ;;  %v312_v21 = vld [vmem:[%s1080_s29 + $0x58] sm:$0xff]  ;;  %v313_v23 = vld [vmem:[%s1080_s29 + $0x60] sm:$0xff]  ;;  %v967_v9 = vmov (!%p687_p2), 0  }
  0x2c   : > { %v765_v22 = vpack.c.bf16 %v312_v21, %v311_v20  ;;  %v314_v24 = vld [vmem:[%s1080_s29 + $0x68] sm:$0xff]  ;;  %v315_v26 = vld [vmem:[%s1080_s29 + $0x70] sm:$0xff]  ;;  %v316_v27 = vld [vmem:[%s1080_s29 + $0x78] sm:$0xff]  ;;  %v445_v36 = vadd.s32 %v444_v34, %v443_v32  ;;  %v450_v37 = vadd.s32 %v449_v35, %v448_v33 }
  0x2d   : > { %v769_v25 = vpack.c.bf16 %v314_v24, %v313_v23  ;;  %v773_v28 = vpack.c.bf16 %v316_v27, %v315_v26  ;;  %v299_v29 = vld [vmem:[%s1075_s13] sm:$0xff]  ;;  %v483_v49 = vld [vmem:[#allocation4] sm:$0xff]  ;;  %v489_v55 = vld [vmem:[#allocation5] sm:$0xff] }
  0x2e   : > { %v300_v30 = vmul.f32 14.285714, %v299_v29  ;;  %vm451_vm4 = vcmp.ne.s32.totalorder %v445_v36, %v450_v37  ;;  %v439_v38 = vld [vmem:[%s1086_s5] sm:$0xff]  ;;  %vm452_vm5 = vcmp.lt.s32.totalorder %v450_v37, 300  ;;  %v459_v1 = vld [vmem:[#allocation3] sm:$0xff] }
  0x2f   : > { %v686_v39 = vsel %vm451_vm4, 1.0, %v965_v7  ;;  %v440_v41 = vld [vmem:[%s1091_s10] sm:$0xff]  ;;  %vm453_vm7 = vmand %vm451_vm4, %vm452_vm5 }
  0x30   : > { %v481_v40 = vmul.f32 %v686_v39, %v439_v38  ;;  %v455_v48 = vld [vmem:[#allocation2] sm:$0xff] }
  0x31   : > { %v494_v5 = vld [vmem:[#allocation6] sm:$0xff] }
  0x32   : > { %751 = vmatpush3.bf16.xpose.msk.msra.mxu0 %vm1099_vm2, %v749_v10  ;;  %v482_v42 = vmul.f32 %v481_v40, %v440_v41 }
  0x33   : > { %752 = vmatprep.subr.bf16.mxu0 %v963_v4 }
  0x3a   : > { %755 = vmatpush3.bf16.xpose.msk.msra.mxu0 %vm1099_vm2, %v753_v13 }
  0x3b   : > { %756 = vmatprep.subr.bf16.mxu0 %v963_v4 }
  0x42   : > { %759 = vmatpush3.bf16.xpose.msk.msra.mxu0 %vm1099_vm2, %v757_v16 }
  0x43   : > { %760 = vmatprep.subr.bf16.mxu0 %v963_v4 }
  0x4a   : > { %763 = vmatpush3.bf16.xpose.msk.msra.mxu0 %vm1099_vm2, %v761_v19 }
  0x4b   : > { %764 = vmatprep.subr.bf16.mxu0 %v963_v4 }
  0x52   : > { %767 = vmatpush3.bf16.xpose.msk.msra.mxu0 %vm1099_vm2, %v765_v22 }
  0x53   : > { %768 = vmatprep.subr.bf16.mxu0 %v963_v4 }
  0x5a   : > { %771 = vmatpush3.bf16.xpose.msk.msra.mxu0 %vm1099_vm2, %v769_v25 }
  0x5b   : > { %772 = vmatprep.subr.bf16.mxu0 %v963_v4 }
  0x62   : > { %775 = vmatpush3.bf16.xpose.msk.msra.mxu0 %vm1099_vm2, %v773_v28 }
  0x69   : > { %742 = vmatmul.mubr.msk.f32.vlgmr.msra.gmra.mrb[0].mxu0 %vm317_vm1, %v300_v30 }
 0x13c   : > { %v435_v43 = vpop.f32.mrb[0].mxu0 }
 0x13d   : > { %v743_v44 = vpop.f32.mrb[1].mxu0  ;;  %v454_v45 = vsel %vm452_vm5, %v435_v43, -inf  ;;  %v484_v46 = vmul.f32 %v482_v42, %v435_v43 }
 0x13e   : > { %456 = vmax.xlane.f32.xlu0 %v454_v45 }
 0x13f   : > { %485 = vadd.xlane.f32.xlu1 %v484_v46 }
 0x143   : > { %490 = vadd.xlane.f32.xlu1 %v482_v42 }
 0x1cb   : > { %v457_v50 = vpop.xlane.xlu0 %456 }
 0x1cc   : > { %v458_v51 = vmax.f32 %v455_v48, %v457_v50  ;;  %v486_v52 = vpop.xlane.xlu1 %485 }
 0x1cd   : > { %v487_v53 = vadd.f32 %v486_v52, %v483_v49 }
 0x1ce   : > { %v460_v54 = vsub.f32 %v455_v48, %v458_v51  ;;  %478 = vst.msk [vmem:[#allocation2] sm:$0xff] %vm476_vm6, %v458_v51  ;;  %466 = vperm.xlu0 %855, %v458_v51  }
 0x1cf   : > { %488 = vst.msk [vmem:[#allocation4] sm:$0xff] %vm476_vm6, %v487_v53 }
 0x1d0   : > { %v491_v56 = vpop.xlane.xlu1 %490  ;;  %v461_v63 = vmul.f32 1.442695, %v460_v54 }
 0x1d1   : > { %v492_v57 = vadd.f32 %v491_v56, %v489_v55 }
 0x1d2   : > { %860 = vset.pattern.permute.xlu0 (!%p687_p2), %v967_v9 }
 0x1d3   : > { %493 = vst.msk [vmem:[#allocation5] sm:$0xff] %vm476_vm6, %v492_v57 }
 0x1d5   : > { %v503_v13 = vld [vmem:[#allocation2] sm:$0xff] (!%p687_p2) }
 0x1d6   : > { %v509_v17 = vld [vmem:[#allocation4] sm:$0xff] (!%p687_p2) }
 0x1da   : > { %v510_v15 = vld [vmem:[#allocation5] sm:$0xff] (!%p687_p2) }
 0x24d   : > { %v467_v58 = vpop.permute.xlu0 %466 }
 0x24e   : > { %v469_v59 = vsub.f32 %v435_v43, %v467_v58 }
 0x250   : > { %v470_v60 = vmul.f32 1.442695, %v469_v59 }
 0x252   : > { %856 = vpow2.f32 %v470_v60 }
 0x253   : > { %858 = vpow2.f32 %v461_v63 }
 0x25c   : > { %v857_v61 = vpop.eup %856 }
 0x25d   : > { %v472_v62 = vsel %vm453_vm7, %v857_v61, 0.0  ;;  %v859_v0 = vpop.eup %858 }
 0x25e   : > { %473 = vadd.xlane.f32.xlu1 %v472_v62  ;;  %v463_v2 = vmul.f32 %v859_v0, %v459_v1 }
 0x262   : > { %495 = vadd.xlane.f32.xlu1 %v481_v40 }
 0x2eb   : > { %v474_v3 = vpop.xlane.xlu1 %473 }
 0x2ec   : > { %v475_v4 = vadd.f32 %v474_v3, %v463_v2  ;;  %502 = sbr.rel (%p687_p2) target bundleno = 912 (0x390), region = 44 }
 0x2ee   : > { %477 = vst.msk [vmem:[#allocation3] sm:$0xff] %vm476_vm6, %v475_v4 }
 0x2ef   : > { %v496_v6 = vpop.xlane.xlu1 %495 }
 0x2f0   : > { %v497_v7 = vadd.f32 %v496_v6, %v494_v5 }
 0x2f2   : > { %498 = vst.msk [vmem:[#allocation6] sm:$0xff] %vm476_vm6, %v497_v7 }
 0x2f5   : > { %v504_v8 = vld [vmem:[#allocation3] sm:$0xff] }
 0x2f6   : > { %v505_v10 = vadd.f32 1e-12, %v504_v8 }
 0x2f8   : > { %861 = vlog2.f32 %v505_v10 }
 0x2f9   : > { %v513_v11 = vld [vmem:[#allocation6] sm:$0xff] }
 0x2fa   : > { %863 = vrcp.f32 %v513_v11 }
 0x302   : > { %v862_v12 = vpop.eup %861 }
 0x303   : > { %v507_v14 = vmul.f32 0.6931472, %v862_v12 }
 0x304   : > { %v864_v19 = vpop.eup %863 }
 0x305   : > { %v508_v16 = vadd.f32 %v507_v14, %v503_v13 }
 0x307   : > { %v511_v18 = vmul.f32 %v510_v15, %v508_v16 }
 0x309   : > { %v512_v20 = vsub.f32 %v509_v17, %v511_v18 }
 0x30b   : > { %v515_v21 = vmul.f32 %v864_v19, %v512_v20 }
 0x30d   : > { %v516_v22 = vmul.f32 -1.0, %v515_v21 }
 0x30f   : > { %519 = vperm.xlu0 %860, %v516_v22  }
 0x38e   : > { %v520_v23 = vpop.permute.xlu0 %519 }
 0x38f   : > { %522 = vst [vmem:[%s262_s8] sm:$0xff] %v520_v23 }
 0x390 PF: > { %s689_s18 = sshll.u32 %s947_s19, 7  ;;  %s537_s28 = sshll.u32 %s262_s8, 4  ;;  %s538_s28 = int_to_ptr.vmem [resolvable:$true] %s537_s28 }
 0x391   : > { %s1155_s26 = scalar_lea.hbm %s1210_s4, %s689_s18  ;;  %s1228_s5 = sand.u32 1, %s935_s16  }
 0x392   : > { %s524_s6 = scalar_lea.sflag [#allocation8], %s1228_s5  ;;  %s865_s9 = scalar_lea.vmem %s538_s28, 128 }
 0x393   : > { %p866_p4 = scmp.ne.s32.totalorder %s538_s28, %s865_s9  ;;  %s968_s11 = smov [#allocation7]  }
 0x394   : > { %s869_s12 = sshll.u32 %s968_s11, 4  ;;  %s870_s12 = int_to_ptr.vmem [resolvable:$false] %s869_s12 }
 0x395   : > { %p867_p5 = pnand %p866_p4, %p1043_p3  ;;  %s871_s13 = scalar_lea.vmem %s870_s12, 256 }
 0x396   : > { %p872_p7 = scmp.lt.s32.totalorder %s538_s28, %s870_s12  ;;  %p873_p8 = scmp.lt.s32.totalorder %s871_s13, %s865_s9 }
 0x397   : > { %p868_p6 = pneg %p867_p5 }
 0x398   : > { %p874_p10 = por %p873_p8, %p872_p7 }
 0x39a   : > { %p875_p11 = pnand %p874_p10, %p868_p6 }
 0x39c   : > { %878 = shalt.err (!%p875_p11)
}
 0x39d   : > { %s879_s19 = scalar_lea.hbm %s1155_s26, 128  ;;  %s883_s23 = scalar_lea.hbm %s1210_s4, 384 }
 0x39e   : > { %p880_p12 = scmp.ne.s32.totalorder %s1155_s26, %s879_s19  ;;  %p884_p1 = scmp.lt.u32.totalorder %s1155_s26, %s1210_s4 }
 0x39f   : > { %p885_p2 = scmp.lt.u32.totalorder %s883_s23, %s879_s19  ;;  %p887_p5 = scmp.lt.u32.totalorder %s879_s19, %s1155_s26 }
 0x3a0   : > { %p881_p13 = pnand %p880_p12, %p1043_p3 }
 0x3a1   : > { %p886_p4 = por %p885_p2, %p884_p1 }
 0x3a2   : > { %p882_p0 = pneg %p881_p13 }
 0x3a3   : > { %p888_p6 = por %p887_p5, %p886_p4 }
 0x3a5   : > { %p889_p7 = pnand %p888_p6, %p882_p0 }
 0x3a7   : > { %892 = shalt.err (!%p889_p7)
}
 0x3a8   : > { %777 = dma.vmem_to_hbm [thread:$0]  (%p1043_p3), %s538_s28, 128, %s1155_s26, %s524_s6  }
 0x3a9 PF: > { %p783_p8 = scmp.ge.s32.totalorder %s959_s22, 2  ;;  %s549_s10 = sand.u32 1, %s931_s15  }
 0x3aa   : > { %s550_s8 = scalar_lea.sflag [#allocation8], %s549_s10 }
 0x3ab   : > { %p780_p10 = pnand %p783_p8, %p1053_p9 }
 0x3ad   : > { %926 = dma.done.wait (!%p780_p10), %s550_s8, 128  }
 0x3ae   : > { %928 = vsyncadd (!%p780_p10), %s550_s8, 4294967168  ;;  %s17_s22 = sadd.s32 1, %s959_s22   ;;  %s1230_s17 = sld [smem:[#allocation10_spill]] }
 0x3af   : > { %p14_p11 = scmp.ge.s32.totalorder %s17_s22, 11   ;;  %s1231_s20 = sld [smem:[#allocation16_spill]] }
 0x3b0   : > { %s1232_s18 = sld [smem:[#allocation11_spill]]  ;;  %s1233_s19 = sld [smem:[#allocation12_spill]] }
 0x3b1   : > { %s1234_s27 = sld [smem:[#allocation13_spill]]  ;;  %s1235_s21 = sld [smem:[#allocation14_spill]] }
 0x3b2   : > { %s1236_s15 = smov %s935_s16  ;;  %16 = sbr.rel (!%p14_p11) target bundleno = 5 (0x5), region = 88 }
 0x3b4   : > { %s1237_s16 = smov %s1230_s17 }
 0x3b5   : > { %s1238_s17 = smov %s1231_s20 }
 0x3b7   : > { %s1239_s20 = smov %s1234_s27 }
 0x3b9   :  { %555 = vsyncpa [#allocation8], 1 }
 0x3ba   :  { %557 = vsyncpa [#allocation8 + $0x1], 1 }

</bundles_post_ra>
